<compile_context>
chip_gen: v5e
topology: v5e:2x2
jax: 0.10.0
libtpu: 0.0.40
codegen_flags: <defaults>
</compile_context>

<pallas_src>
import functools
import math

import jax
import jax.numpy as jnp
from jax.experimental import pallas as pl
from jax.experimental.pallas import tpu as pltpu


def _upsample_kernel(x_ref, s_ref, o_ref, *, precision):
    # x_ref: (T, p*h*w)       packed frame rows
    # s_ref: (p*h*w, p*H*W)   block-diagonal one-hot nearest selector (constant)
    # o_ref: (T, p*H*W)       lane-dense output slab
    o_ref[...] = jnp.dot(
        x_ref[...],
        s_ref[...],
        precision=precision,
        preferred_element_type=jnp.float32,
    ).astype(o_ref.dtype)


def _nearest_selector(h, w, H, W, p, dtype):
    """Block-diagonal one-hot (p*h*w, p*H*W) selector for PyTorch 'nearest'."""
    k = jnp.arange(H * W, dtype=jnp.int32)
    di, dj = k // W, k % W
    si = jnp.minimum((di * h) // H, h - 1)   # floor(dst * in / out) == torch 'nearest'
    sj = jnp.minimum((dj * w) // W, w - 1)
    src = si * w + sj                        # (H*W,)
    base = (src[None, :] == jnp.arange(h * w, dtype=jnp.int32)[:, None]).astype(dtype)
    if p > 1:
        base = jnp.kron(jnp.eye(p, dtype=dtype), base)   # pack p frames per row
    return base


def _frames_per_row(n, hw):
    """Pack p frames per LHS row so p*hw >= 128 (full lane width / MXU K)."""
    if hw >= 128:
        return 1
    p_target = -(-128 // hw)                 # ceil(128 / hw)
    for cand in range(min(p_target, n), 0, -1):
        if n % cand == 0:
            return cand
    return 1


@functools.partial(jax.jit, static_argnames=("scale_factor",))
def rotating_upsample(x, scale_factor=(2.0, 2.0)):
    """x: (b, r, c, h, w) -> (b, r, c, H, W), nearest upsample (matches torch)."""
    b, r, c, h, w = x.shape
    sh, sw = scale_factor
    H = int(math.floor(h * float(sh)))       # torch: out = floor(in * scale)
    W = int(math.floor(w * float(sw)))
    n = b * r * c
    hw, HW = h * w, H * W

    orig_dtype = x.dtype
    if not jnp.issubdtype(orig_dtype, jnp.floating):
        # TODO(synk): exact integer path (v7x MXU has no int support); the f32
        # round trip here is exact only up to 2**24.
        x = x.astype(jnp.float32)
    dt = x.dtype
    itemsize = jnp.dtype(dt).itemsize

    # One-hot "copy" must stay exact: pin f32 to HIGHEST (default may round to
    # bf16 on the MXU); bf16/f16 inputs are already exact with an f32 accumulator.
    precision = (jax.lax.Precision.HIGHEST if dt == jnp.float32
                 else jax.lax.Precision.DEFAULT)

    # ---- frame packing: >=128-wide contraction for tiny frames (v5e item) ----
    p = _frames_per_row(n, hw)
    n_rows = n // p
    row_in, row_out = p * hw, p * HW

    # ---- block sizing: ~2 MiB in+out per block, >= 8 (even) grid steps ----
    pack = {4: 8, 2: 16, 1: 32}.get(itemsize, 8)       # sublane packing multiple
    target_pair_bytes = 2 << 20                        # ~85% HBM roofline territory
    min_steps = 8                                      # keep pipelining + megacore
    bytes_per_row = itemsize * (row_in + row_out)
    t_bytes = max(pack, target_pair_bytes // bytes_per_row)
    t_steps = pl.cdiv(n_rows, min_steps)
    T = min(t_bytes, t_steps)
    T = max(pack, (T // pack) * pack)
    T = min(T, n_rows)                                 # T == n_rows or T % pack == 0
    grid_steps = pl.cdiv(n_rows, T)
    if grid_steps > 1 and grid_steps % 2 == 1 and T > pack:
        T -= pack                                      # best effort: even #steps (v7x 2 TCs)
        grid_steps = pl.cdiv(n_rows, T)

    sel = _nearest_selector(h, w, H, W, p, dt)         # (row_in, row_out), resident
    x2 = x.reshape(n_rows, row_in)                     # free contiguous reshape

    sel_bytes = row_in * row_out * itemsize
    block_bytes = 2 * T * bytes_per_row + sel_bytes    # dbl-buffered I/O + 1x selector
    vmem_limit = int(min(96 << 20, max(32 << 20, 4 * block_bytes)))

    cost = pl.CostEstimate(
        flops=2 * n_rows * row_in * row_out,
        transcendentals=0,
        bytes_accessed=itemsize * n_rows * (row_in + row_out) + sel_bytes,
    )

    out2 = pl.pallas_call(
        functools.partial(_upsample_kernel, precision=precision),
        out_shape=jax.ShapeDtypeStruct((n_rows, row_out), dt),
        grid=(grid_steps,),
        in_specs=[
            pl.BlockSpec((T, row_in), lambda i: (i, 0)),            # frame-row chunk
            pl.BlockSpec((row_in, row_out), lambda i: (0, 0),       # constant selector
                         pipeline_mode=pl.Buffered(1)),             # single-buffered
        ],
        out_specs=pl.BlockSpec((T, row_out), lambda i: (i, 0)),     # lane-dense slab
        compiler_params=pltpu.CompilerParams(
            dimension_semantics=("parallel",),
            vmem_limit_bytes=vmem_limit,
        ),
        cost_estimate=cost,
    )(x2, sel)

    out = out2.reshape(b, r, c, H, W)                  # free contiguous reshape back
    if out.dtype != orig_dtype:
        out = out.astype(orig_dtype)
    return out


if __name__ == "__main__":
    key = jax.random.PRNGKey(0)
    b, r, c, h, w = 2, 4, 4, 8, 8
    scale_factor = (2.0, 2.0)
    x = jax.random.normal(key, (b, r, c, h, w), dtype=jnp.float32)

    out = rotating_upsample(x, scale_factor=scale_factor)
    out = jax.block_until_ready(out)

    # Reference: nearest upsample with integer factor 2 == repeat along h and w.
    sh_i, sw_i = int(scale_factor[0]), int(scale_factor[1])
    ref = jnp.repeat(jnp.repeat(x, sh_i, axis=3), sw_i, axis=4)

    assert out.shape == ref.shape, (out.shape, ref.shape)
    assert jnp.allclose(out, ref, atol=1e-6), "mismatch vs reference"

    print("KERNEL_OK")
</pallas_src>

<mosaic_0001>
module attributes {stable_mosaic.version = 11 : i64} {
  func.func @_upsample_kernel(%arg0: i32, %arg1: memref<8x128xf32, #tpu.memory_space<vmem>>, %arg2: memref<128x512xf32, #tpu.memory_space<vmem>>, %arg3: memref<8x512xf32, #tpu.memory_space<vmem>>) attributes {dimension_semantics = [#tpu.dimension_semantics<parallel>], iteration_bounds = array<i64: 2>, scalar_prefetch = 0 : i64, scratch_operands = 0 : i64, tpu.core_type = #tpu.core_type<tc>, window_params = [{transform_indices = @transform_0, window_bounds = array<i64: 8, 128>}, {pipeline_mode = #tpu.pipeline_mode<synchronous>, transform_indices = @transform_1, window_bounds = array<i64: 128, 512>}, {transform_indices = @transform_2, window_bounds = array<i64: 8, 512>}]} {
    %c0 = arith.constant 0 : index
    %c0_0 = arith.constant 0 : index
    %0 = vector.load %arg1[%c0, %c0_0] : memref<8x128xf32, #tpu.memory_space<vmem>>, vector<8x128xf32>
    %c0_1 = arith.constant 0 : index
    %c0_2 = arith.constant 0 : index
    %1 = vector.load %arg2[%c0_1, %c0_2] : memref<128x512xf32, #tpu.memory_space<vmem>>, vector<128x512xf32>
    %cst = arith.constant dense<0.000000e+00> : vector<8x512xf32>
    %2 = tpu.matmul %0, %1, %cst {dimension_numbers = #tpu.dot_dimension_numbers<[1], [0], [0], [1], [0, 0, 1, 1], [], []>, precision = #tpu.contract_precision<fp32>} : vector<8x128xf32>, vector<128x512xf32>, vector<8x512xf32> -> vector<8x512xf32>
    %c0_3 = arith.constant 0 : index
    %c0_4 = arith.constant 0 : index
    %3 = vector.load %arg3[%c0_3, %c0_4] : memref<8x512xf32, #tpu.memory_space<vmem>>, vector<8x512xf32>
    tpu.vector_store %arg3[%c0_3, %c0_4], %2 {strides = array<i32>} : memref<8x512xf32, #tpu.memory_space<vmem>>, vector<8x512xf32>,
    return
  }
  func.func @transform_0(%arg0: i32) -> (i32, i32) {
    %c0_i32 = arith.constant 0 : i32
    %c0_i32_0 = arith.constant 0 : i32
    return %arg0, %c0_i32 : i32, i32
  }
  func.func @transform_1(%arg0: i32) -> (i32, i32) {
    %c0_i32 = arith.constant 0 : i32
    %c0_i32_0 = arith.constant 0 : i32
    %c0_i32_1 = arith.constant 0 : i32
    return %c0_i32, %c0_i32_0 : i32, i32
  }
  func.func @transform_2(%arg0: i32) -> (i32, i32) {
    %c0_i32 = arith.constant 0 : i32
    %c0_i32_0 = arith.constant 0 : i32
    return %arg0, %c0_i32 : i32, i32
  }
}

</mosaic_0001>

<bundles_post_ra>
// kernel: rotating_upsample.1
= control target key start
LH: loop header
LB: loop body
LE: loop exit
PB: predicated region body
PF: predicated region fallthrough
CT: control target
= control target key end

     0   :  { %s1671_s9 = smov 0   ;;  %s2896_s0 = inlined_call_operand.vmem [shape: f32[16,128], index: 0, kind: input, shape index: {}]   ;;  %s2897_s1 = inlined_call_operand.vmem [shape: f32[128,512], index: 1, kind: input, shape index: {}]   ;;  %s2898_s2 = inlined_call_operand.vmem [shape: f32[16,512], index: 2, kind: output, shape index: {}]  }
   0x1 LB: > { %s1629_s10 = sadd.s32 4294967295, %s1654_s9   ;;  %p1633_p0 = scmp.ge.s32.totalorder %s1654_s9, 1  ;;  %s1654_s9 = sphi %s1671_s9, %s12_s9  }
   0x2   : > { %p111_p1 = scmp.lt.s32.totalorder %s1654_s9, 3 }
   0x4   : > { %p112_p2 = pnand %p1633_p0, %p111_p1 }
   0x6   : > { %115 = sbr.rel (%p112_p2) target bundleno = 355 (0x163), region = 28 }
   0xb   : > { %v202_v0 = vld [vmem:[%s2897_s1 + $0x1e0] sm:$0xff]  ;;  %v203_v55 = vld [vmem:[%s2897_s1 + $0x1e8] sm:$0xff]  ;;  %p1983_p3 = scmp.lt.s32.totalorder %s1629_s10, 1 }
   0xc   : > { %v198_v1 = vld [vmem:[%s2897_s1 + $0x1c0] sm:$0xff]  ;;  %v1688_v3 = vand.u32 4294901760, %v202_v0  ;;  %v199_v63 = vld [vmem:[%s2897_s1 + $0x1c8] sm:$0xff] }
   0xd   : > { %v194_v2 = vld [vmem:[%s2897_s1 + $0x1a0] sm:$0xff]  ;;  %v1690_v4 = vand.u32 4294901760, %v198_v1  ;;  %s3034_s10 = smov (!%p1983_p3, %s1629_s10), 1 }
   0xe   : > { %v1692_v5 = vand.u32 4294901760, %v194_v2  ;;  %v190_v6 = vld [vmem:[%s2897_s1 + $0x180] sm:$0xff]  ;;  %207 = vmatpush.msra.mxu0 %v1688_v3  ;;  %v1717_v14 = vsub.f32 %v202_v0, %v1688_v3  ;;  %403 = vmatpush.msra.mxu3 %v1688_v3  ;;  %s1634_s18 = sshll.u32 %s3034_s10, 3  ;;  %s1639_s14 = sshll.u32 %s3034_s10, 5 }
   0xf   : > { %v186_v7 = vld [vmem:[%s2897_s1 + $0x160] sm:$0xff]  ;;  %v1703_v9 = vand.u32 4294901760, %v190_v6  ;;  %v1720_v15 = vsub.f32 %v198_v1, %v1690_v4  ;;  %s135_s25 = scalar_lea.vmem %s2896_s0, %s1634_s18  ;;  %s2880_s10 = scalar_lea.vmem %s2898_s2, %s1639_s14 }
  0x10   : > { %v182_v8 = vld [vmem:[%s2897_s1 + $0x140] sm:$0xff]  ;;  %v1705_v10 = vand.u32 4294901760, %v186_v7  ;;  %v1724_v16 = vsub.f32 %v194_v2, %v1692_v5  ;;  %350 = vmatpush.msra.mxu2 %v1717_v14  ;;  %209 = vmatpush.msra.mxu0 %v1690_v4  ;;  %v2915_v22 = vand.u32 4294901760, %v1717_v14 }
  0x11   : > { %v1707_v11 = vand.u32 4294901760, %v182_v8  ;;  %v178_v12 = vld [vmem:[%s2897_s1 + $0x120] sm:$0xff]  ;;  %v1729_v18 = vsub.f32 %v190_v6, %v1703_v9  ;;  %v2912_v23 = vand.u32 4294901760, %v1720_v15  ;;  %405 = vmatpush.msra.mxu3 %v1690_v4 }
  0x12   : > { %v174_v13 = vld [vmem:[%s2897_s1 + $0x100] sm:$0xff]  ;;  %v1726_v17 = vand.u32 4294901760, %v178_v12  ;;  %v1732_v19 = vsub.f32 %v186_v7, %v1705_v10  ;;  %v2911_v24 = vand.u32 4294901760, %v1724_v16  ;;  %353 = vmatpush.msra.mxu2 %v1720_v15  ;;  %211 = vmatpush.msra.mxu0 %v1692_v5  ;;  %v250_v29 = vsub.f32 %v1717_v14, %v2915_v22 }
  0x13   : > { %v1735_v20 = vsub.f32 %v182_v8, %v1707_v11  ;;  %v170_v21 = vld [vmem:[%s2897_s1 + $0xe0] sm:$0xff]  ;;  %v1745_v25 = vand.u32 4294901760, %v174_v13  ;;  %v2909_v26 = vand.u32 4294901760, %v1729_v18  ;;  %v256_v30 = vsub.f32 %v1720_v15, %v2912_v23  ;;  %407 = vmatpush.msra.mxu3 %v1692_v5 }
  0x14   : > { %v2907_v27 = vand.u32 4294901760, %v1732_v19  ;;  %v1751_v28 = vsub.f32 %v178_v12, %v1726_v17  ;;  %v262_v31 = vsub.f32 %v1724_v16, %v2911_v24  ;;  %v1764_v32 = vand.u32 4294901760, %v170_v21  ;;  %v166_v34 = vld [vmem:[%s2897_s1 + $0xc0] sm:$0xff]  ;;  %356 = vmatpush.msra.mxu2 %v1724_v16  ;;  %213 = vmatpush.msra.mxu0 %v1703_v9  ;;  %v163_v24 = vld [vmem:[%s2897_s1 + $0xa8] sm:$0xff] }
  0x15   : > { %v2906_v33 = vand.u32 4294901760, %v1735_v20  ;;  %v162_v35 = vld [vmem:[%s2897_s1 + $0xa0] sm:$0xff]  ;;  %v251_v36 = vand.u32 4294901760, %v250_v29  ;;  %v257_v37 = vand.u32 4294901760, %v256_v30  ;;  %v268_v38 = vsub.f32 %v1729_v18, %v2909_v26  ;;  %409 = vmatpush.msra.mxu3 %v1703_v9 }
  0x16   : > { %v1780_v39 = vsub.f32 %v174_v13, %v1745_v25  ;;  %v158_v40 = vld [vmem:[%s2897_s1 + $0x80] sm:$0xff]  ;;  %v274_v41 = vsub.f32 %v1732_v19, %v2907_v27  ;;  %v1790_v42 = vsub.f32 %v170_v21, %v1764_v32  ;;  %359 = vmatpush.msra.mxu2 %v1729_v18  ;;  %v263_v43 = vand.u32 4294901760, %v262_v31  ;;  %215 = vmatpush.msra.mxu0 %v1705_v10  ;;  %v195_v13 = vld [vmem:[%s2897_s1 + $0x1a8] sm:$0xff] }
  0x17   : > { %252 = vmatpush.msra.mxu1 %v251_v36  ;;  %v2904_v44 = vand.u32 4294901760, %v1751_v28  ;;  %v1794_v45 = vand.u32 4294901760, %v166_v34  ;;  %v1796_v46 = vand.u32 4294901760, %v162_v35  ;;  %411 = vmatpush.msra.mxu3 %v1705_v10  ;;  %v1800_v47 = vand.u32 4294901760, %v158_v40  ;;  %v154_v48 = vld [vmem:[%s2897_s1 + $0x60] sm:$0xff] }
  0x18   : > { %362 = vmatpush.msra.mxu2 %v1732_v19  ;;  %v269_v49 = vand.u32 4294901760, %v268_v38  ;;  %v280_v50 = vsub.f32 %v1735_v20, %v2906_v33  ;;  %v2903_v51 = vand.u32 4294901760, %v1780_v39  ;;  %v150_v53 = vld [vmem:[%s2897_s1 + $0x40] sm:$0xff]  ;;  %217 = vmatpush.msra.mxu0 %v1707_v11  ;;  %v2902_v54 = vand.u32 4294901760, %v1790_v42 }
  0x19   : > { %258 = vmatpush.msra.mxu1 %v257_v37  ;;  %v1811_v52 = vsub.f32 %v166_v34, %v1794_v45  ;;  %413 = vmatpush.msra.mxu3 %v1707_v11  ;;  %v275_v56 = vand.u32 4294901760, %v274_v41  ;;  %v286_v57 = vsub.f32 %v1751_v28, %v2904_v44  ;;  %v1827_v58 = vsub.f32 %v162_v35, %v1796_v46  ;;  %v146_v60 = vld [vmem:[%s2897_s1 + $0x20] sm:$0xff]  ;;  %v191_v37 = vld [vmem:[%s2897_s1 + $0x188] sm:$0xff] }
  0x1a   : > { %365 = vmatpush.msra.mxu2 %v1735_v20  ;;  %v1829_v59 = vand.u32 4294901760, %v154_v48  ;;  %219 = vmatpush.msra.mxu0 %v1726_v17  ;;  %v1837_v61 = vsub.f32 %v158_v40, %v1800_v47  ;;  %v1839_v62 = vand.u32 4294901760, %v150_v53  ;;  %v281_v0 = vand.u32 4294901760, %v280_v50  ;;  %v142_v6 = vld [vmem:[%s2897_s1] sm:$0xff]  ;;  %v187_v50 = vld [vmem:[%s2897_s1 + $0x168] sm:$0xff] }
  0x1b   : > { %264 = vmatpush.msra.mxu1 %v263_v43  ;;  %415 = vmatpush.msra.mxu3 %v1726_v17  ;;  %v292_v1 = vsub.f32 %v1780_v39, %v2903_v51  ;;  %v2900_v2 = vand.u32 4294901760, %v1811_v52  ;;  %v1852_v7 = vand.u32 4294901760, %v203_v55  ;;  %v298_v8 = vsub.f32 %v1790_v42, %v2902_v54 }
  0x1c   : > { %368 = vmatpush.msra.mxu2 %v1751_v28  ;;  %221 = vmatpush.msra.mxu0 %v1745_v25  ;;  %v1859_v12 = vand.u32 4294901760, %v146_v60  ;;  %v287_v21 = vand.u32 4294901760, %v286_v57  ;;  %v2899_v29 = vand.u32 4294901760, %v1827_v58  ;;  %v1867_v30 = vsub.f32 %v154_v48, %v1829_v59 }
  0x1d   : > { %270 = vmatpush.msra.mxu1 %v269_v49  ;;  %417 = vmatpush.msra.mxu3 %v1745_v25  ;;  %v1869_v31 = vand.u32 4294901760, %v199_v63  ;;  %v2901_v34 = vand.u32 4294901760, %v1837_v61  ;;  %v1875_v35 = vsub.f32 %v150_v53, %v1839_v62  ;;  %v1877_v36 = vand.u32 4294901760, %v142_v6 }
  0x1e   : > { %371 = vmatpush.msra.mxu2 %v1780_v39  ;;  %223 = vmatpush.msra.mxu0 %v1764_v32  ;;  %v293_v38 = vand.u32 4294901760, %v292_v1  ;;  %v304_v40 = vsub.f32 %v1811_v52, %v2900_v2  ;;  %v1887_v41 = vsub.f32 %v203_v55, %v1852_v7  ;;  %v1889_v43 = vand.u32 4294901760, %v195_v13 }
  0x1f   : > { %276 = vmatpush.msra.mxu1 %v275_v56  ;;  %419 = vmatpush.msra.mxu3 %v1764_v32  ;;  %2955 = vst [vmem:[#allocation2_spill] sm:$0xff] %v1877_v36  ;;  %v299_v48 = vand.u32 4294901760, %v298_v8  ;;  %v1894_v49 = vsub.f32 %v146_v60, %v1859_v12  ;;  %v310_v53 = vsub.f32 %v1827_v58, %v2899_v29  ;;  %v2905_v55 = vand.u32 4294901760, %v1867_v30  ;;  %v183_v60 = vld [vmem:[%s2897_s1 + $0x148] sm:$0xff] }
  0x20   : > { %374 = vmatpush.msra.mxu2 %v1790_v42  ;;  %225 = vmatpush.msra.mxu0 %v1794_v45  ;;  %v1905_v56 = vsub.f32 %v199_v63, %v1869_v31  ;;  %v1907_v57 = vand.u32 4294901760, %v191_v37  ;;  %v2908_v1 = vand.u32 4294901760, %v1875_v35  ;;  %v1919_v8 = vsub.f32 %v142_v6, %v1877_v36 }
  0x21   : > { %282 = vmatpush.msra.mxu1 %v281_v0  ;;  %421 = vmatpush.msra.mxu3 %v1794_v45  ;;  %v316_v0 = vsub.f32 %v1837_v61, %v2901_v34  ;;  %v305_v63 = vand.u32 4294901760, %v304_v40  ;;  %v1924_v29 = vsub.f32 %v195_v13, %v1889_v43  ;;  %v1926_v2 = vand.u32 4294901760, %v187_v50  ;;  %v179_v34 = vld [vmem:[%s2897_s1 + $0x128] sm:$0xff] }
  0x22   : > { %377 = vmatpush.msra.mxu2 %v1811_v52  ;;  %227 = vmatpush.msra.mxu0 %v1796_v46  ;;  %v2914_v6 = vand.u32 4294901760, %v1894_v49  ;;  %v311_v40 = vand.u32 4294901760, %v310_v53  ;;  %v322_v13 = vsub.f32 %v1867_v30, %v2905_v55  ;;  %v2913_v54 = vand.u32 4294901760, %v1905_v56  ;;  %v175_v55 = vld [vmem:[%s2897_s1 + $0x108] sm:$0xff] }
  0x23   : > { %288 = vmatpush.msra.mxu1 %v287_v21  ;;  %423 = vmatpush.msra.mxu3 %v1796_v46  ;;  %v2910_v21 = vand.u32 4294901760, %v1887_v41  ;;  %2956 = vst [vmem:[#allocation3_spill] sm:$0xff] %v1924_v29  ;;  %v1942_v51 = vsub.f32 %v191_v37, %v1907_v57  ;;  %v2916_v44 = vand.u32 4294901760, %v1919_v8  ;;  %v1950_v53 = vand.u32 4294901760, %v179_v34 }
  0x24   : > { %380 = vmatpush.msra.mxu2 %v1827_v58  ;;  %229 = vmatpush.msra.mxu0 %v1800_v47  ;;  %v317_v37 = vand.u32 4294901760, %v316_v0  ;;  %v2917_v27 = vand.u32 4294901760, %v1924_v29  ;;  %v171_v0 = vld [vmem:[%s2897_s1 + $0xe8] sm:$0xff]  ;;  %v1979_v23 = vand.u32 4294901760, %v175_v55 }
  0x25   : > { %294 = vmatpush.msra.mxu1 %v293_v38  ;;  %425 = vmatpush.msra.mxu3 %v1800_v47  ;;  %v1934_v38 = vand.u32 4294901760, %v183_v60  ;;  %2957 = vst [vmem:[#allocation4_spill] sm:$0xff] %v1942_v51  ;;  %v591_v33 = vsub.f32 %v1887_v41, %v2910_v21  ;;  %v597_v21 = vsub.f32 %v1905_v56, %v2913_v54  ;;  %v167_v54 = vld [vmem:[%s2897_s1 + $0xc8] sm:$0xff] }
  0x26   : > { %383 = vmatpush.msra.mxu2 %v1837_v61  ;;  %231 = vmatpush.msra.mxu0 %v1829_v59 }
  0x27   : > { %300 = vmatpush.msra.mxu1 %v299_v48  ;;  %427 = vmatpush.msra.mxu3 %v1829_v59  ;;  %v328_v48 = vsub.f32 %v1875_v35, %v2908_v1  ;;  %v1961_v1 = vsub.f32 %v187_v50, %v1926_v2  ;;  %v1969_v26 = vsub.f32 %v183_v60, %v1934_v38  ;;  %v323_v50 = vand.u32 4294901760, %v322_v13 }
  0x28   : > { %386 = vmatpush.msra.mxu2 %v1867_v30  ;;  %233 = vmatpush.msra.mxu0 %v1839_v62  ;;  %v1993_v13 = vsub.f32 %v179_v34, %v1950_v53 }
  0x29   : > { %306 = vmatpush.msra.mxu1 %v305_v63  ;;  %429 = vmatpush.msra.mxu3 %v1839_v62  ;;  %v334_v63 = vsub.f32 %v1894_v49, %v2914_v6  ;;  %2958 = vst [vmem:[#allocation5_spill] sm:$0xff] %v1969_v26  ;;  %v329_v60 = vand.u32 4294901760, %v328_v48  ;;  %v592_v6 = vand.u32 4294901760, %v591_v33  ;;  %v603_v48 = vsub.f32 %v1924_v29, %v2917_v27 }
  0x2a   : > { %389 = vmatpush.msra.mxu2 %v1875_v35  ;;  %235 = vmatpush.msra.mxu0 %v1859_v12  ;;  %v598_v33 = vand.u32 4294901760, %v597_v21  ;;  %v2960_v27 = vand.u32 4294901760, %v1942_v51  ;;  %v2016_v29 = vsub.f32 %v175_v55, %v1979_v23  ;;  %v2964_v21 = vand.u32 4294901760, %v1969_v26 }
  0x2b   : > { %312 = vmatpush.msra.mxu1 %v311_v40  ;;  %431 = vmatpush.msra.mxu3 %v1859_v12  ;;  %v340_v40 = vsub.f32 %v1919_v8, %v2916_v44  ;;  %v2003_v44 = vand.u32 4294901760, %v171_v0  ;;  %v335_v34 = vand.u32 4294901760, %v334_v63  ;;  %v2018_v63 = vand.u32 4294901760, %v167_v54 }
  0x2c   : > { %392 = vmatpush.msra.mxu2 %v1894_v49  ;;  %237 = vmatpush.msra.mxu0 %v1877_v36  ;;  %v609_v22 = vsub.f32 %v1942_v51, %v2960_v27  ;;  %v159_v27 = vld [vmem:[%s2897_s1 + $0x88] sm:$0xff]  ;;  %v604_v55 = vand.u32 4294901760, %v603_v48  ;;  %v2962_v51 = vand.u32 4294901760, %v1961_v1 }
  0x2d   : > { %318 = vmatpush.msra.mxu1 %v317_v37  ;;  %433 = vmatpush.msra.mxu3 %v1877_v36  ;;  %v2961_v37 = vand.u32 4294901760, %v1717_v14  ;;  %v2037_v14 = vsub.f32 %v171_v0, %v2003_v44  ;;  %v2052_v48 = vsub.f32 %v167_v54, %v2018_v63  ;;  %v147_v0 = vld [vmem:[%s2897_s1 + $0x28] sm:$0xff] }
  0x2e   : > { %395 = vmatpush.msra.mxu2 %v1919_v8  ;;  %v615_v36 = vsub.f32 %v1961_v1, %v2962_v51  ;;  %v610_v51 = vand.u32 4294901760, %v609_v22  ;;  %v151_v22 = vld [vmem:[%s2897_s1 + $0x48] sm:$0xff] }
  0x2f   : > { %324 = vmatpush.msra.mxu1 %v323_v50  ;;  %444 = vmatpush.msrb.mxu0 %v2961_v37  ;;  %v341_v50 = vand.u32 4294901760, %v340_v40  ;;  %v2039_v37 = vand.u32 4294901760, %v163_v24  ;;  %v2963_v40 = vand.u32 4294901760, %v1720_v15  ;;  %v2054_v15 = vand.u32 4294901760, %v159_v27 }
  0x30   : > { %548 = vmatpush.msrb.mxu2 %v1852_v7  ;;  %593 = vmatpush.msrb.mxu3 %v592_v6  ;;  %v155_v6 = vld [vmem:[%s2897_s1 + $0x68] sm:$0xff]  ;;  %v616_v54 = vand.u32 4294901760, %v615_v36 }
  0x31   : > { %330 = vmatpush.msra.mxu1 %v329_v60  ;;  %448 = vmatpush.msrb.mxu0 %v2963_v40  ;;  %v621_v60 = vsub.f32 %v1969_v26, %v2964_v21  ;;  %v2965_v40 = vand.u32 4294901760, %v1724_v16  ;;  %v2966_v21 = vand.u32 4294901760, %v1993_v13  ;;  %v2070_v16 = vand.u32 4294901760, %v155_v6 }
  0x32   : > { %550 = vmatpush.msrb.mxu2 %v1869_v31  ;;  %599 = vmatpush.msrb.mxu3 %v598_v33  ;;  %v2068_v33 = vsub.f32 %v163_v24, %v2039_v37  ;;  %v2968_v24 = vand.u32 4294901760, %v2016_v29 }
  0x33   : > { %336 = vmatpush.msra.mxu1 %v335_v34  ;;  %452 = vmatpush.msrb.mxu0 %v2965_v40  ;;  %v627_v26 = vsub.f32 %v1993_v13, %v2966_v21  ;;  %v638_v34 = vand.u32 4294901760, %v2037_v14  ;;  %v2967_v40 = vand.u32 4294901760, %v1729_v18  ;;  %v622_v21 = vand.u32 4294901760, %v621_v60 }
  0x34   : > { %552 = vmatpush.msrb.mxu2 %v1889_v43  ;;  %605 = vmatpush.msrb.mxu3 %v604_v55  ;;  %v633_v36 = vsub.f32 %v2016_v29, %v2968_v24  ;;  %v2087_v18 = vsub.f32 %v159_v27, %v2054_v15  ;;  %v2969_v55 = vand.u32 4294901760, %v1732_v19  ;;  %v2100_v27 = vsub.f32 %v155_v6, %v2070_v16 }
  0x35   : > { %342 = vmatpush.msra.mxu1 %v341_v50  ;;  %456 = vmatpush.msrb.mxu0 %v2967_v40  ;;  %v2089_v50 = vand.u32 4294901760, %v151_v22  ;;  %v628_v60 = vand.u32 4294901760, %v627_v26  ;;  %v650_v40 = vand.u32 4294901760, %v2068_v33  ;;  %v2102_v24 = vand.u32 4294901760, %v147_v0 }
  0x36   : > { %554 = vmatpush.msrb.mxu2 %v1907_v57  ;;  %611 = vmatpush.msrb.mxu3 %v610_v51  ;;  %v639_v51 = vsub.f32 %v2037_v14, %v638_v34  ;;  %v634_v19 = vand.u32 4294901760, %v633_v36  ;;  %v2971_v26 = vand.u32 4294901760, %v2052_v48 }
  0x37   : > { %511 = vmatpush.msrb.mxu1 %v1688_v3  ;;  %460 = vmatpush.msrb.mxu0 %v2969_v55  ;;  %v141_v3 = vld [vmem:[%s135_s25] sm:$0xff]  ;;  %v656_v55 = vand.u32 4294901760, %v2087_v18  ;;  %v2113_v6 = vsub.f32 %v151_v22, %v2089_v50  ;;  %v651_v22 = vsub.f32 %v2068_v33, %v650_v40 }
  0x38   : > { %556 = vmatpush.msrb.mxu2 %v1926_v2  ;;  %617 = vmatpush.msrb.mxu3 %v616_v54  ;;  %v645_v54 = vsub.f32 %v2052_v48, %v2971_v26  ;;  %v640_v36 = vand.u32 4294901760, %v639_v51 }
  0x39   : > { %513 = vmatpush.msrb.mxu1 %v1690_v4  ;;  %v2970_v4 = vand.u32 4294901760, %v1735_v20  ;;  %v2118_v20 = vand.u32 4294901760, %v141_v3  ;;  %v668_v51 = vand.u32 4294901760, %v2113_v6 }
  0x3a   : > { %558 = vmatpush.msrb.mxu2 %v1934_v38  ;;  %623 = vmatpush.msrb.mxu3 %v622_v21  ;;  %v143_v21 = vld [vmem:[%s2897_s1 + $0x8] sm:$0xff]  ;;  %v646_v26 = vand.u32 4294901760, %v645_v54 }
  0x3b   : > { %515 = vmatpush.msrb.mxu1 %v1692_v5  ;;  %464 = vmatpush.msrb.mxu0 %v2970_v4  ;;  %v2972_v5 = vand.u32 4294901760, %v1751_v28  ;;  %2973 = vst [vmem:[#allocation6_spill] sm:$0xff] %v2118_v20  ;;  %v662_v4 = vand.u32 4294901760, %v2100_v27  ;;  %v2974_v28 = vand.u32 4294901760, %v1780_v39  ;;  %v652_v39 = vand.u32 4294901760, %v651_v22 }
  0x3c   : > { %560 = vmatpush.msrb.mxu2 %v1950_v53  ;;  %629 = vmatpush.msrb.mxu3 %v628_v60  ;;  %v657_v60 = vsub.f32 %v2087_v18, %v656_v55  ;;  %v2977_v22 = vand.u32 4294901760, %v1827_v58 }
  0x3d   : > { %517 = vmatpush.msrb.mxu1 %v1703_v9  ;;  %468 = vmatpush.msrb.mxu0 %v2972_v5  ;;  %v2129_v9 = vsub.f32 %v147_v0, %v2102_v24  ;;  %v2139_v5 = vand.u32 4294901760, %v143_v21  ;;  %v2975_v0 = vand.u32 4294901760, %v1790_v42 }
  0x3e   : > { %562 = vmatpush.msrb.mxu2 %v1979_v23  ;;  %635 = vmatpush.msrb.mxu3 %v634_v19  ;;  %v663_v19 = vsub.f32 %v2100_v27, %v662_v4  ;;  %v658_v42 = vand.u32 4294901760, %v657_v60 }
  0x3f   : > { %519 = vmatpush.msrb.mxu1 %v1705_v10  ;;  %472 = vmatpush.msrb.mxu0 %v2974_v28  ;;  %v2145_v10 = vsub.f32 %v141_v3, %v2118_v20  ;;  %v674_v54 = vand.u32 4294901760, %v2129_v9  ;;  %v669_v3 = vsub.f32 %v2113_v6, %v668_v51 }
  0x40   : > { %564 = vmatpush.msrb.mxu2 %v2003_v44  ;;  %641 = vmatpush.msrb.mxu3 %v640_v36  ;;  %v2160_v36 = vsub.f32 %v143_v21, %v2139_v5  ;;  %v2978_v21 = vand.u32 4294901760, %v1837_v61  ;;  %v2980_v61 = vand.u32 4294901760, %v1875_v35 }
  0x41   : > { %521 = vmatpush.msrb.mxu1 %v1707_v11  ;;  %476 = vmatpush.msrb.mxu0 %v2975_v0  ;;  %v2976_v11 = vand.u32 4294901760, %v1811_v52  ;;  %v664_v52 = vand.u32 4294901760, %v663_v19  ;;  %v675_v28 = vsub.f32 %v2129_v9, %v674_v54 }
  0x42   : > { %566 = vmatpush.msrb.mxu2 %v2018_v63  ;;  %647 = vmatpush.msrb.mxu3 %v646_v26  ;;  %v680_v58 = vand.u32 4294901760, %v2160_v36  ;;  %v2979_v26 = vand.u32 4294901760, %v1867_v30  ;;  %v2981_v30 = vand.u32 4294901760, %v1894_v49  ;;  %v2986_v49 = vld [vmem:[#allocation3_spill] sm:$0xff] }
  0x43   : > { %523 = vmatpush.msrb.mxu1 %v1726_v17  ;;  %480 = vmatpush.msrb.mxu0 %v2976_v11  ;;  %v2166_v17 = vand.u32 4294901760, %v2145_v10 }
  0x44   : > { %568 = vmatpush.msrb.mxu2 %v2039_v37  ;;  %653 = vmatpush.msrb.mxu3 %v652_v39 }
  0x45   : > { %525 = vmatpush.msrb.mxu1 %v1745_v25  ;;  %484 = vmatpush.msrb.mxu0 %v2977_v22  ;;  %v670_v25 = vand.u32 4294901760, %v669_v3  ;;  %v241_v60 = vsub.f32 %v2145_v10, %v2166_v17  ;;  %v168_v22 = vld [vmem:[%s2897_s1 + $0xd0] sm:$0xff] }
  0x46   : > { %570 = vmatpush.msrb.mxu2 %v2054_v15  ;;  %659 = vmatpush.msrb.mxu3 %v658_v42 }
  0x47   : > { %527 = vmatpush.msrb.mxu1 %v1764_v32  ;;  %488 = vmatpush.msrb.mxu0 %v2978_v21  ;;  %v676_v32 = vand.u32 4294901760, %v675_v28  ;;  %v2193_v0 = vand.u32 4294901760, %v241_v60 }
  0x48   : > { %572 = vmatpush.msrb.mxu2 %v2070_v16  ;;  %665 = vmatpush.msrb.mxu3 %v664_v52 }
  0x49   : > { %529 = vmatpush.msrb.mxu1 %v1794_v45  ;;  %492 = vmatpush.msrb.mxu0 %v2979_v26  ;;  %v681_v45 = vsub.f32 %v2160_v36, %v680_v58 }
  0x4a   : > { %574 = vmatpush.msrb.mxu2 %v2089_v50  ;;  %671 = vmatpush.msrb.mxu3 %v670_v25 }
  0x4b   : > { %531 = vmatpush.msrb.mxu1 %v1796_v46  ;;  %496 = vmatpush.msrb.mxu0 %v2980_v61  ;;  %v2982_v46 = vand.u32 4294901760, %v1919_v8  ;;  %v682_v35 = vand.u32 4294901760, %v681_v45  ;;  %v2991_v8 = vld [vmem:[#allocation5_spill] sm:$0xff]  ;;  %v160_v61 = vld [vmem:[%s2897_s1 + $0x90] sm:$0xff] }
  0x4c   : > { %576 = vmatpush.msrb.mxu2 %v2102_v24  ;;  %677 = vmatpush.msrb.mxu3 %v676_v32  ;;  %v2390_v32 = vand.u32 4294901760, %v168_v22 }
  0x4d   : > { %533 = vmatpush.msrb.mxu1 %v1800_v47  ;;  %500 = vmatpush.msrb.mxu0 %v2981_v30  ;;  %v2983_v47 = vand.u32 4294901760, %v1887_v41 }
  0x4e   : > { %398 = vmatmul.f32.vlgmr.msra.gmra.mxu2 %v2145_v10  ;;  %243 = vmatmul.f32.vlgmr.msra.gmra.mxu0 %v2193_v0 }
  0x4f   : > { %535 = vmatpush.msrb.mxu1 %v1829_v59  ;;  %504 = vmatpush.msrb.mxu0 %v2982_v46  ;;  %v2984_v59 = vand.u32 4294901760, %v1905_v56 }
  0x50   : > { %578 = vmatpush.msrb.mxu2 %v2139_v5  ;;  %437 = vmatmul.f32.vlgmr.msra.gmra.mxu3 %v2166_v17 }
  0x51   : > { %537 = vmatpush.msrb.mxu1 %v1839_v62  ;;  %691 = vmatpush.msra.mxu0 %v1887_v41  ;;  %v2985_v62 = vld [vmem:[#allocation2_spill] sm:$0xff]  ;;  %v2987_v41 = vand.u32 4294901760, %v2986_v49 }
  0x52   : > { %785 = vmatpush.msra.mxu2 %v2983_v47  ;;  %683 = vmatpush.msrb.mxu3 %v682_v35 }
  0x53   : > { %539 = vmatpush.msrb.mxu1 %v1859_v12  ;;  %694 = vmatpush.msra.mxu0 %v1905_v56  ;;  %v2988_v12 = vld [vmem:[#allocation4_spill] sm:$0xff] }
  0x54   : > { %344 = vmatmul.f32.vlgmr.msra.gmra.mxu1 %v2118_v20  ;;  %789 = vmatpush.msra.mxu2 %v2984_v59  ;;  %v2989_v56 = vand.u32 4294901760, %v2988_v12  ;;  %v156_v59 = vld [vmem:[%s2897_s1 + $0x70] sm:$0xff] }
  0x55   : > { %852 = vmatpush.msra.mxu3 %v1852_v7  ;;  %541 = vmatpush.msrb.mxu1 %v2985_v62 }
  0x56   : > { %697 = vmatpush.msra.mxu0 %v2986_v49  ;;  %793 = vmatpush.msra.mxu2 %v2987_v41  ;;  %v2419_v41 = vsub.f32 %v168_v22, %v2390_v32 }
  0x57   : > { %744 = vmatpush.msra.mxu1 %v1852_v7  ;;  %854 = vmatpush.msra.mxu3 %v1869_v31  ;;  %v2990_v7 = vand.u32 4294901760, %v1961_v1 }
  0x58   : > { %700 = vmatpush.msra.mxu0 %v2988_v12  ;;  %797 = vmatpush.msra.mxu2 %v2989_v56  ;;  %v2421_v12 = vand.u32 4294901760, %v160_v61 }
  0x59   : > { %746 = vmatpush.msra.mxu1 %v1869_v31  ;;  %856 = vmatpush.msra.mxu3 %v1889_v43  ;;  %v2992_v31 = vand.u32 4294901760, %v2991_v8 }
  0x5a   : > { %506 = vmatmul.f32.vlgmr.msrb.gmra.mxu0 %v2118_v20  ;;  %801 = vmatpush.msra.mxu2 %v2990_v7  ;;  %v152_v7 = vld [vmem:[%s2897_s1 + $0x50] sm:$0xff] }
  0x5b   : > { %748 = vmatpush.msra.mxu1 %v1889_v43  ;;  %703 = vmatpush.msra.mxu0 %v1961_v1  ;;  %v2993_v43 = vand.u32 4294901760, %v1993_v13  ;;  %v2994_v1 = vand.u32 4294901760, %v2016_v29 }
  0x5c   : > { %858 = vmatpush.msra.mxu3 %v1907_v57  ;;  %543 = vmatmul.f32.vlgmr.msrb.gmra.mxu1 %v2118_v20 }
  0x5d   : > { %706 = vmatpush.msra.mxu0 %v2991_v8  ;;  %750 = vmatpush.msra.mxu1 %v1907_v57  ;;  %v204_v57 = vld [vmem:[%s2897_s1 + $0x1f0] sm:$0xff] }
  0x5e   : > { %805 = vmatpush.msra.mxu2 %v2992_v31  ;;  %860 = vmatpush.msra.mxu3 %v1926_v2 }
  0x5f   : > { %709 = vmatpush.msra.mxu0 %v1993_v13  ;;  %752 = vmatpush.msra.mxu1 %v1926_v2  ;;  %v2254_v2 = vand.u32 4294901760, %v204_v57  ;;  %v196_v13 = vld [vmem:[%s2897_s1 + $0x1b0] sm:$0xff] }
  0x60   : > { %809 = vmatpush.msra.mxu2 %v2993_v43  ;;  %862 = vmatpush.msra.mxu3 %v1934_v38 }
  0x61   : > { %712 = vmatpush.msra.mxu0 %v2016_v29  ;;  %754 = vmatpush.msra.mxu1 %v1934_v38  ;;  %v200_v38 = vld [vmem:[%s2897_s1 + $0x1d0] sm:$0xff]  ;;  %v2995_v29 = vand.u32 4294901760, %v2052_v48 }
  0x62   : > { %813 = vmatpush.msra.mxu2 %v2994_v1  ;;  %864 = vmatpush.msra.mxu3 %v1950_v53 }
  0x63   : > { %715 = vmatpush.msra.mxu0 %v2037_v14  ;;  %756 = vmatpush.msra.mxu1 %v1950_v53  ;;  %v2266_v53 = vand.u32 4294901760, %v200_v38  ;;  %v2285_v14 = vand.u32 4294901760, %v196_v13 }
  0x64   : > { %817 = vmatpush.msra.mxu2 %v638_v34  ;;  %866 = vmatpush.msra.mxu3 %v1979_v23 }
  0x65   : > { %718 = vmatpush.msra.mxu0 %v2052_v48  ;;  %758 = vmatpush.msra.mxu1 %v1979_v23  ;;  %v2275_v23 = vsub.f32 %v204_v57, %v2254_v2  ;;  %v188_v48 = vld [vmem:[%s2897_s1 + $0x170] sm:$0xff]  ;;  %v2436_v57 = vand.u32 4294901760, %v156_v59 }
  0x66   : > { %821 = vmatpush.msra.mxu2 %v2995_v29  ;;  %868 = vmatpush.msra.mxu3 %v2003_v44  ;;  %v2927_v29 = vand.u32 4294901760, %v2419_v41 }
  0x67   : > { %721 = vmatpush.msra.mxu0 %v2068_v33  ;;  %760 = vmatpush.msra.mxu1 %v2003_v44  ;;  %v192_v44 = vld [vmem:[%s2897_s1 + $0x190] sm:$0xff]  ;;  %v2941_v34 = vand.u32 4294901760, %v2275_v23 }
  0x68   : > { %825 = vmatpush.msra.mxu2 %v650_v40  ;;  %870 = vmatpush.msra.mxu3 %v2018_v63  ;;  %v2299_v33 = vand.u32 4294901760, %v192_v44  ;;  %v2312_v40 = vsub.f32 %v196_v13, %v2285_v14  ;;  %v2446_v13 = vsub.f32 %v160_v61, %v2421_v12 }
  0x69   : > { %724 = vmatpush.msra.mxu0 %v2087_v18  ;;  %762 = vmatpush.msra.mxu1 %v2018_v63  ;;  %v2293_v63 = vsub.f32 %v200_v38, %v2266_v53  ;;  %v2303_v18 = vand.u32 4294901760, %v188_v48 }
  0x6a   : > { %829 = vmatpush.msra.mxu2 %v656_v55  ;;  %872 = vmatpush.msra.mxu3 %v2039_v37  ;;  %v932_v55 = vsub.f32 %v2275_v23, %v2941_v34 }
  0x6b   : > { %727 = vmatpush.msra.mxu0 %v2100_v27  ;;  %764 = vmatpush.msra.mxu1 %v2039_v37  ;;  %v184_v37 = vld [vmem:[%s2897_s1 + $0x150] sm:$0xff] }
  0x6c   : > { %833 = vmatpush.msra.mxu2 %v662_v4  ;;  %874 = vmatpush.msra.mxu3 %v2054_v15  ;;  %v180_v27 = vld [vmem:[%s2897_s1 + $0x130] sm:$0xff]  ;;  %v2329_v4 = vand.u32 4294901760, %v184_v37  ;;  %v933_v11 = vand.u32 4294901760, %v932_v55 }
  0x6d   : > { %730 = vmatpush.msra.mxu0 %v2113_v6  ;;  %766 = vmatpush.msra.mxu1 %v2054_v15  ;;  %v2940_v15 = vand.u32 4294901760, %v2293_v63  ;;  %v2327_v6 = vsub.f32 %v192_v44, %v2299_v33  ;;  %v2343_v39 = vand.u32 4294901760, %v180_v27  ;;  %v2448_v44 = vand.u32 4294901760, %v152_v7 }
  0x6e   : > { %837 = vmatpush.msra.mxu2 %v668_v51  ;;  %876 = vmatpush.msra.mxu3 %v2070_v16  ;;  %v2938_v51 = vand.u32 4294901760, %v2312_v40  ;;  %v2359_v3 = vsub.f32 %v184_v37, %v2329_v4  ;;  %v205_v37 = vld [vmem:[%s2897_s1 + $0x1f8] sm:$0xff] }
  0x6f   : > { %733 = vmatpush.msra.mxu0 %v2129_v9  ;;  %768 = vmatpush.msra.mxu1 %v2070_v16  ;;  %v176_v16 = vld [vmem:[%s2897_s1 + $0x110] sm:$0xff]  ;;  %v2337_v9 = vsub.f32 %v188_v48, %v2303_v18  ;;  %v938_v19 = vsub.f32 %v2293_v63, %v2940_v15  ;;  %v2935_v42 = vand.u32 4294901760, %v2327_v6  ;;  %v2373_v28 = vsub.f32 %v180_v27, %v2343_v39 }
  0x70   : > { %841 = vmatpush.msra.mxu2 %v674_v54  ;;  %878 = vmatpush.msra.mxu3 %v2089_v50  ;;  %v2350_v54 = vand.u32 4294901760, %v176_v16  ;;  %v944_v52 = vsub.f32 %v2312_v40, %v2938_v51  ;;  %v2933_v60 = vand.u32 4294901760, %v2359_v3  ;;  %v148_v48 = vld [vmem:[%s2897_s1 + $0x30] sm:$0xff] }
  0x71   : > { %584 = vmatmul.f32.vlgmr.msrb.gmra.mxu2 %v2193_v0  ;;  %736 = vmatpush.msra.mxu0 %v2160_v36  ;;  %v2934_v36 = vand.u32 4294901760, %v2337_v9  ;;  %v939_v21 = vand.u32 4294901760, %v938_v19  ;;  %v950_v26 = vsub.f32 %v2327_v6, %v2935_v42  ;;  %v2931_v30 = vand.u32 4294901760, %v2373_v28 }
  0x72   : > { %770 = vmatpush.msra.mxu1 %v2089_v50  ;;  %845 = vmatpush.msra.mxu2 %v680_v58  ;;  %v172_v50 = vld [vmem:[%s2897_s1 + $0xf0] sm:$0xff]  ;;  %v2380_v25 = vsub.f32 %v176_v16, %v2350_v54  ;;  %v945_v45 = vand.u32 4294901760, %v944_v52  ;;  %v962_v49 = vsub.f32 %v2359_v3, %v2933_v60  ;;  %v2464_v19 = vsub.f32 %v156_v59, %v2436_v57 }
  0x73   : > { %880 = vmatpush.msra.mxu3 %v2102_v24  ;;  %889 = vmatpush.msrb.mxu0 %v2254_v2  ;;  %v164_v58 = vld [vmem:[%s2897_s1 + $0xb0] sm:$0xff]  ;;  %v951_v62 = vand.u32 4294901760, %v950_v26  ;;  %v968_v8 = vsub.f32 %v2373_v28, %v2931_v30  ;;  %v2471_v22 = vand.u32 4294901760, %v148_v48  ;;  %v986_v52 = vsub.f32 %v2419_v41, %v2927_v29 }
  0x74   : > { %685 = vmatmul.f32.vlgmr.msrb.gmra.mxu3 %v2118_v20  ;;  %1032 = vmatpush.msrb.mxu2 %v2275_v23  ;;  %v2406_v35 = vand.u32 4294901760, %v164_v58  ;;  %v2930_v47 = vand.u32 4294901760, %v2380_v25  ;;  %v963_v38 = vand.u32 4294901760, %v962_v49  ;;  %v2481_v26 = vand.u32 4294901760, %v205_v37  ;;  %v197_v49 = vld [vmem:[%s2897_s1 + $0x1b8] sm:$0xff] }
  0x75   : > { %772 = vmatpush.msra.mxu1 %v2102_v24  ;;  %882 = vmatpush.msra.mxu3 %v2139_v5  ;;  %v2375_v24 = vand.u32 4294901760, %v172_v50  ;;  %v969_v27 = vand.u32 4294901760, %v968_v8  ;;  %v987_v8 = vand.u32 4294901760, %v986_v52  ;;  %v189_v52 = vld [vmem:[%s2897_s1 + $0x178] sm:$0xff] }
  0x76   : > { %891 = vmatpush.msrb.mxu0 %v2266_v53  ;;  %1035 = vmatpush.msrb.mxu2 %v2293_v63  ;;  %v2434_v43 = vsub.f32 %v164_v58, %v2406_v35  ;;  %v974_v1 = vsub.f32 %v2380_v25, %v2930_v47  ;;  %v2479_v58 = vsub.f32 %v152_v7, %v2448_v44  ;;  %v2546_v47 = vand.u32 4294901760, %v189_v52 }
  0x77   : > { %1085 = vmatpush.msrb.mxu3 %v2254_v2  ;;  %774 = vmatpush.msra.mxu1 %v2139_v5  ;;  %v956_v5 = vsub.f32 %v2337_v9, %v2934_v36  ;;  %v2404_v46 = vsub.f32 %v172_v50, %v2375_v24  ;;  %v144_v50 = vld [vmem:[%s2897_s1 + $0x10] sm:$0xff] }
  0x78   : > { %893 = vmatpush.msrb.mxu0 %v2285_v14  ;;  %1038 = vmatpush.msrb.mxu2 %v2312_v40  ;;  %v2926_v16 = vand.u32 4294901760, %v2434_v43  ;;  %v2488_v61 = vand.u32 4294901760, %v144_v50  ;;  %v2574_v42 = vsub.f32 %v189_v52, %v2546_v47 }
  0x79   : > { %934 = vmatpush.msrb.mxu1 %v933_v11  ;;  %1087 = vmatpush.msrb.mxu3 %v2266_v53  ;;  %v957_v56 = vand.u32 4294901760, %v956_v5  ;;  %v2929_v31 = vand.u32 4294901760, %v2404_v46  ;;  %v975_v11 = vand.u32 4294901760, %v974_v1  ;;  %v201_v5 = vld [vmem:[%s2897_s1 + $0x1d8] sm:$0xff] }
  0x7a   : > { %847 = vmatmul.f32.vlgmr.msra.gmra.mxu2 %v2118_v20  ;;  %895 = vmatpush.msrb.mxu0 %v2299_v33  ;;  %v992_v59 = vsub.f32 %v2434_v43, %v2926_v16  ;;  %v2503_v7 = vand.u32 4294901760, %v201_v5  ;;  %2999 = vst [vmem:[#allocation5_spill] sm:$0xff] %v2574_v42 }
  0x7b   : > { %940 = vmatpush.msrb.mxu1 %v939_v21  ;;  %1041 = vmatpush.msrb.mxu2 %v2327_v6  ;;  %v980_v55 = vsub.f32 %v2404_v46, %v2929_v31  ;;  %v2925_v21 = vand.u32 4294901760, %v2446_v13 }
  0x7c   : > { %1089 = vmatpush.msrb.mxu3 %v2285_v14  ;;  %739 = vmatmul.f32.vlgmr.msra.gmra.mxu0 %v2145_v10  ;;  %v2534_v16 = vsub.f32 %v201_v5, %v2503_v7 }
  0x7d   : > { %884 = vmatmul.f32.vlgmr.msra.gmra.mxu3 %v2118_v20  ;;  %897 = vmatpush.msrb.mxu0 %v2303_v18  ;;  %v998_v1 = vsub.f32 %v2446_v13, %v2925_v21 }
  0x7e   : > { %946 = vmatpush.msrb.mxu1 %v945_v45  ;;  %1044 = vmatpush.msrb.mxu2 %v2337_v9  ;;  %v981_v45 = vand.u32 4294901760, %v980_v55  ;;  %v2519_v55 = vsub.f32 %v144_v50, %v2488_v61  ;;  %2996 = vst [vmem:[#allocation2_spill] sm:$0xff] %v2534_v16 }
  0x7f   : > { %1091 = vmatpush.msrb.mxu3 %v2299_v33  ;;  %778 = vmatmul.f32.vlgmr.msra.gmra.mxu1 %v2166_v17 }
  0x80   : > { %899 = vmatpush.msrb.mxu0 %v2329_v4  ;;  %952 = vmatpush.msrb.mxu1 %v951_v62  ;;  %v2928_v62 = vand.u32 4294901760, %v2464_v19  ;;  %v2939_v5 = vand.u32 4294901760, %v2519_v55 }
  0x81   : > { %1047 = vmatpush.msrb.mxu2 %v2359_v3  ;;  %1093 = vmatpush.msrb.mxu3 %v2303_v18 }
  0x82   : > { %901 = vmatpush.msrb.mxu0 %v2343_v39  ;;  %958 = vmatpush.msrb.mxu1 %v957_v56  ;;  %v2501_v56 = vsub.f32 %v148_v48, %v2471_v22  ;;  %v193_v48 = vld [vmem:[%s2897_s1 + $0x198] sm:$0xff]  ;;  %v1004_v21 = vsub.f32 %v2464_v19, %v2928_v62 }
  0x83   : > { %1050 = vmatpush.msrb.mxu2 %v2373_v28  ;;  %1095 = vmatpush.msrb.mxu3 %v2329_v4  ;;  %v2536_v29 = vand.u32 4294901760, %v193_v48 }
  0x84   : > { %903 = vmatpush.msrb.mxu0 %v2350_v54  ;;  %964 = vmatpush.msrb.mxu1 %v963_v38  ;;  %v2932_v38 = vand.u32 4294901760, %v2479_v58  ;;  %v2936_v50 = vand.u32 4294901760, %v2501_v56 }
  0x85   : > { %1053 = vmatpush.msrb.mxu2 %v2380_v25  ;;  %1097 = vmatpush.msrb.mxu3 %v2343_v39  ;;  %v2567_v36 = vsub.f32 %v193_v48, %v2536_v29  ;;  %v1022_v48 = vsub.f32 %v2519_v55, %v2939_v5 }
  0x86   : > { %905 = vmatpush.msrb.mxu0 %v2375_v24  ;;  %970 = vmatpush.msrb.mxu1 %v969_v27  ;;  %v2511_v27 = vsub.f32 %v205_v37, %v2481_v26  ;;  %v993_v37 = vand.u32 4294901760, %v992_v59  ;;  %v999_v59 = vand.u32 4294901760, %v998_v1  ;;  %v1010_v62 = vsub.f32 %v2479_v58, %v2932_v38  ;;  %v181_v38 = vld [vmem:[%s2897_s1 + $0x138] sm:$0xff] }
  0x87   : > { %1056 = vmatpush.msrb.mxu2 %v2404_v46  ;;  %1099 = vmatpush.msrb.mxu3 %v2350_v54  ;;  %v1016_v60 = vsub.f32 %v2501_v56, %v2936_v50  ;;  %2998 = vst [vmem:[#allocation4_spill] sm:$0xff] %v2567_v36  ;;  %v177_v50 = vld [vmem:[%s2897_s1 + $0x118] sm:$0xff] }
  0x88   : > { %907 = vmatpush.msrb.mxu0 %v2390_v32  ;;  %976 = vmatpush.msrb.mxu1 %v975_v11  ;;  %v2521_v11 = vand.u32 4294901760, %v197_v49  ;;  %v2937_v31 = vand.u32 4294901760, %v2511_v27  ;;  %v2600_v34 = vand.u32 4294901760, %v177_v50 }
  0x89   : > { %1059 = vmatpush.msrb.mxu2 %v2419_v41  ;;  %1101 = vmatpush.msrb.mxu3 %v2375_v24  ;;  %v1017_v51 = vand.u32 4294901760, %v1016_v60  ;;  %v1023_v60 = vand.u32 4294901760, %v1022_v48  ;;  %v165_v48 = vld [vmem:[%s2897_s1 + $0xb8] sm:$0xff] }
  0x8a   : > { %909 = vmatpush.msrb.mxu0 %v2406_v35  ;;  %982 = vmatpush.msrb.mxu1 %v981_v45  ;;  %v185_v45 = vld [vmem:[%s2897_s1 + $0x158] sm:$0xff]  ;;  %v2552_v30 = vsub.f32 %v197_v49, %v2521_v11  ;;  %v2942_v49 = vand.u32 4294901760, %v2534_v16  ;;  %v2629_v20 = vsub.f32 %v177_v50, %v2600_v34 }
  0x8b   : > { %1062 = vmatpush.msrb.mxu2 %v2434_v43  ;;  %1103 = vmatpush.msrb.mxu3 %v2390_v32  ;;  %v2555_v1 = vand.u32 4294901760, %v185_v45 }
  0x8c   : > { %911 = vmatpush.msrb.mxu0 %v2421_v12  ;;  %988 = vmatpush.msrb.mxu1 %v987_v8  ;;  %2997 = vst [vmem:[#allocation3_spill] sm:$0xff] %v2552_v30  ;;  %v1005_v8 = vand.u32 4294901760, %v1004_v21  ;;  %v1011_v21 = vand.u32 4294901760, %v1010_v62  ;;  %v1279_v5 = vsub.f32 %v2534_v16, %v2942_v49  ;;  %v169_v62 = vld [vmem:[%s2897_s1 + $0xd8] sm:$0xff]  ;;  %v3000_v49 = vand.u32 4294901760, %v2552_v30 }
  0x8d   : > { %1065 = vmatpush.msrb.mxu2 %v2446_v13  ;;  %1105 = vmatpush.msrb.mxu3 %v2406_v35  ;;  %v2589_v52 = vsub.f32 %v185_v45, %v2555_v1 }
  0x8e   : > { %913 = vmatpush.msrb.mxu0 %v2436_v57  ;;  %994 = vmatpush.msrb.mxu1 %v993_v37  ;;  %v1273_v37 = vsub.f32 %v2511_v27, %v2937_v31  ;;  %v173_v31 = vld [vmem:[%s2897_s1 + $0xf8] sm:$0xff]  ;;  %v1285_v15 = vsub.f32 %v2552_v30, %v3000_v49  ;;  %v1280_v49 = vand.u32 4294901760, %v1279_v5 }
  0x8f   : > { %1068 = vmatpush.msrb.mxu2 %v2464_v19  ;;  %1107 = vmatpush.msrb.mxu3 %v2421_v12  ;;  %v161_v5 = vld [vmem:[%s2897_s1 + $0x98] sm:$0xff] }
  0x90   : > { %915 = vmatpush.msrb.mxu0 %v2448_v44  ;;  %1000 = vmatpush.msrb.mxu1 %v999_v59  ;;  %v2585_v59 = vand.u32 4294901760, %v181_v38  ;;  %v1274_v45 = vand.u32 4294901760, %v1273_v37  ;;  %v3001_v37 = vand.u32 4294901760, %v2275_v23  ;;  %v2631_v23 = vand.u32 4294901760, %v169_v62 }
  0x91   : > { %1071 = vmatpush.msrb.mxu2 %v2479_v58  ;;  %1109 = vmatpush.msrb.mxu3 %v2436_v57 }
  0x92   : > { %917 = vmatpush.msrb.mxu0 %v2471_v22  ;;  %1006 = vmatpush.msrb.mxu1 %v1005_v8  ;;  %v2613_v16 = vsub.f32 %v181_v38, %v2585_v59  ;;  %v3002_v38 = vand.u32 4294901760, %v2567_v36  ;;  %v3004_v8 = vand.u32 4294901760, %v2574_v42 }
  0x93   : > { %1074 = vmatpush.msrb.mxu2 %v2501_v56  ;;  %1111 = vmatpush.msrb.mxu3 %v2448_v44 }
  0x94   : > { %919 = vmatpush.msrb.mxu0 %v2488_v61  ;;  %1012 = vmatpush.msrb.mxu1 %v1011_v21  ;;  %v2615_v21 = vand.u32 4294901760, %v173_v31  ;;  %v1291_v30 = vsub.f32 %v2567_v36, %v3002_v38  ;;  %v1286_v38 = vand.u32 4294901760, %v1285_v15  ;;  %v2953_v50 = vand.u32 4294901760, %v2613_v16  ;;  %v157_v15 = vld [vmem:[%s2897_s1 + $0x78] sm:$0xff] }
  0x95   : > { %1077 = vmatpush.msrb.mxu2 %v2519_v55  ;;  %1113 = vmatpush.msrb.mxu3 %v2471_v22 }
  0x96   : > { %1126 = vmatpush.msra.mxu0 %v3001_v37  ;;  %1018 = vmatpush.msrb.mxu1 %v1017_v51  ;;  %v3003_v37 = vand.u32 4294901760, %v2293_v63  ;;  %v1297_v51 = vsub.f32 %v2574_v42, %v3004_v8  ;;  %v2644_v36 = vsub.f32 %v173_v31, %v2615_v21  ;;  %v2646_v63 = vand.u32 4294901760, %v165_v48 }
  0x97   : > { %1230 = vmatpush.msra.mxu2 %v2481_v26  ;;  %1115 = vmatpush.msrb.mxu3 %v2488_v61  ;;  %v3006_v8 = vand.u32 4294901760, %v2589_v52  ;;  %v1292_v31 = vand.u32 4294901760, %v1291_v30  ;;  %v1309_v30 = vsub.f32 %v2613_v16, %v2953_v50 }
  0x98   : > { %1130 = vmatpush.msra.mxu0 %v3003_v37  ;;  %1024 = vmatpush.msrb.mxu1 %v1023_v60  ;;  %v3005_v37 = vand.u32 4294901760, %v2312_v40  ;;  %v2660_v60 = vsub.f32 %v169_v62, %v2631_v23  ;;  %v2662_v40 = vand.u32 4294901760, %v161_v5  ;;  %v1320_v62 = vand.u32 4294901760, %v2644_v36 }
  0x99   : > { %1232 = vmatpush.msra.mxu2 %v2503_v7  ;;  %1275 = vmatpush.msra.mxu3 %v1274_v45  ;;  %v1303_v42 = vsub.f32 %v2589_v52, %v3006_v8  ;;  %v2954_v45 = vand.u32 4294901760, %v2629_v20  ;;  %v153_v8 = vld [vmem:[%s2897_s1 + $0x58] sm:$0xff] }
  0x9a   : > { %1134 = vmatpush.msra.mxu0 %v3005_v37  ;;  %1193 = vmatpush.msra.mxu1 %v2254_v2  ;;  %v3007_v2 = vand.u32 4294901760, %v2327_v6  ;;  %v1298_v37 = vand.u32 4294901760, %v1297_v51  ;;  %v2678_v6 = vand.u32 4294901760, %v157_v15  ;;  %v2691_v50 = vand.u32 4294901760, %v153_v8 }
  0x9b   : > { %1234 = vmatpush.msra.mxu2 %v2521_v11  ;;  %1281 = vmatpush.msra.mxu3 %v1280_v49  ;;  %v2676_v49 = vsub.f32 %v165_v48, %v2646_v63  ;;  %v1304_v51 = vand.u32 4294901760, %v1303_v42  ;;  %v2689_v48 = vsub.f32 %v161_v5, %v2662_v40  ;;  %v1310_v42 = vand.u32 4294901760, %v1309_v30 }
  0x9c   : > { %1138 = vmatpush.msra.mxu0 %v3007_v2  ;;  %1195 = vmatpush.msra.mxu1 %v2266_v53  ;;  %v3008_v53 = vand.u32 4294901760, %v2337_v9  ;;  %v1326_v2 = vand.u32 4294901760, %v2660_v60  ;;  %v149_v9 = vld [vmem:[%s2897_s1 + $0x38] sm:$0xff]  ;;  %v1321_v5 = vsub.f32 %v2644_v36, %v1320_v62 }
  0x9d   : > { %1236 = vmatpush.msra.mxu2 %v2536_v29  ;;  %1287 = vmatpush.msra.mxu3 %v1286_v38  ;;  %v1315_v38 = vsub.f32 %v2629_v20, %v2954_v45  ;;  %v3010_v45 = vand.u32 4294901760, %v2373_v28  ;;  %v1338_v30 = vand.u32 4294901760, %v2689_v48  ;;  %v2721_v28 = vsub.f32 %v153_v8, %v2691_v50 }
  0x9e   : > { %1142 = vmatpush.msra.mxu0 %v3008_v53  ;;  %1197 = vmatpush.msra.mxu1 %v2285_v14  ;;  %v3009_v14 = vand.u32 4294901760, %v2359_v3  ;;  %v2705_v53 = vsub.f32 %v157_v15, %v2678_v6  ;;  %v2710_v3 = vand.u32 4294901760, %v149_v9  ;;  %v1327_v15 = vsub.f32 %v2660_v60, %v1326_v2 }
  0x9f   : > { %1238 = vmatpush.msra.mxu2 %v2546_v47  ;;  %1293 = vmatpush.msra.mxu3 %v1292_v31  ;;  %v1332_v31 = vand.u32 4294901760, %v2676_v49  ;;  %v3012_v8 = vand.u32 4294901760, %v2404_v46 }
  0xa0   : > { %1146 = vmatpush.msra.mxu0 %v3009_v14  ;;  %1199 = vmatpush.msra.mxu1 %v2299_v33  ;;  %v145_v33 = vld [vmem:[%s2897_s1 + $0x18] sm:$0xff] }
  0xa1   : > { %1240 = vmatpush.msra.mxu2 %v2555_v1  ;;  %1299 = vmatpush.msra.mxu3 %v1298_v37  ;;  %v1316_v37 = vand.u32 4294901760, %v1315_v38  ;;  %v1344_v38 = vand.u32 4294901760, %v2705_v53  ;;  %v2731_v14 = vand.u32 4294901760, %v145_v33 }
  0xa2   : > { %1150 = vmatpush.msra.mxu0 %v3010_v45  ;;  %1201 = vmatpush.msra.mxu1 %v2303_v18  ;;  %v3011_v18 = vand.u32 4294901760, %v2380_v25  ;;  %v1322_v45 = vand.u32 4294901760, %v1321_v5  ;;  %v2737_v25 = vsub.f32 %v149_v9, %v2710_v3  ;;  %v1350_v5 = vand.u32 4294901760, %v2721_v28 }
  0xa3   : > { %1242 = vmatpush.msra.mxu2 %v2585_v59  ;;  %1305 = vmatpush.msra.mxu3 %v1304_v51  ;;  %v1333_v51 = vsub.f32 %v2676_v49, %v1332_v31  ;;  %v1345_v46 = vsub.f32 %v2705_v53, %v1344_v38  ;;  %v2752_v9 = vsub.f32 %v145_v33, %v2731_v14  ;;  %v3016_v33 = vand.u32 4294901760, %v2464_v19 }
  0xa4   : > { %1154 = vmatpush.msra.mxu0 %v3011_v18  ;;  %1203 = vmatpush.msra.mxu1 %v2329_v4  ;;  %v1328_v4 = vand.u32 4294901760, %v1327_v15  ;;  %v3013_v18 = vand.u32 4294901760, %v2419_v41  ;;  %v1356_v41 = vand.u32 4294901760, %v2737_v25  ;;  %v1351_v15 = vsub.f32 %v2721_v28, %v1350_v5 }
  0xa5   : > { %1244 = vmatpush.msra.mxu2 %v2600_v34  ;;  %1311 = vmatpush.msra.mxu3 %v1310_v42  ;;  %v1339_v42 = vsub.f32 %v2689_v48, %v1338_v30  ;;  %v3018_v19 = vand.u32 4294901760, %v2501_v56  ;;  %v3021_v56 = vld [vmem:[#allocation6_spill] sm:$0xff] }
  0xa6   : > { %1158 = vmatpush.msra.mxu0 %v3012_v8  ;;  %1205 = vmatpush.msra.mxu1 %v2343_v39  ;;  %v1334_v39 = vand.u32 4294901760, %v1333_v51  ;;  %v1357_v51 = vsub.f32 %v2737_v25, %v1356_v41 }
  0xa7   : > { %1246 = vmatpush.msra.mxu2 %v2615_v21  ;;  %1317 = vmatpush.msra.mxu3 %v1316_v37  ;;  %v3014_v37 = vand.u32 4294901760, %v2434_v43  ;;  %v1346_v43 = vand.u32 4294901760, %v1345_v46 }
  0xa8   : > { %1162 = vmatpush.msra.mxu0 %v3013_v18  ;;  %1207 = vmatpush.msra.mxu1 %v2350_v54  ;;  %v1340_v54 = vand.u32 4294901760, %v1339_v42  ;;  %v1358_v8 = vand.u32 4294901760, %v1357_v51 }
  0xa9   : > { %1248 = vmatpush.msra.mxu2 %v2631_v23  ;;  %1323 = vmatpush.msra.mxu3 %v1322_v45  ;;  %v3015_v45 = vand.u32 4294901760, %v2446_v13  ;;  %v1352_v13 = vand.u32 4294901760, %v1351_v15 }
  0xaa   : > { %1166 = vmatpush.msra.mxu0 %v3014_v37  ;;  %1209 = vmatpush.msra.mxu1 %v2375_v24  ;;  %v1362_v24 = vand.u32 4294901760, %v2752_v9 }
  0xab   : > { %1250 = vmatpush.msra.mxu2 %v2646_v63  ;;  %1329 = vmatpush.msra.mxu3 %v1328_v4  ;;  %v3024_v4 = vld [vmem:[#allocation3_spill] sm:$0xff] }
  0xac   : > { %1170 = vmatpush.msra.mxu0 %v3015_v45  ;;  %1211 = vmatpush.msra.mxu1 %v2390_v32  ;;  %v3017_v32 = vand.u32 4294901760, %v2479_v58 }
  0xad   : > { %1252 = vmatpush.msra.mxu2 %v2662_v40  ;;  %1335 = vmatpush.msra.mxu3 %v1334_v39 }
  0xae   : > { %1174 = vmatpush.msra.mxu0 %v3016_v33  ;;  %1213 = vmatpush.msra.mxu1 %v2406_v35  ;;  %v1363_v35 = vsub.f32 %v2752_v9, %v1362_v24 }
  0xaf   : > { %1254 = vmatpush.msra.mxu2 %v2678_v6  ;;  %1341 = vmatpush.msra.mxu3 %v1340_v54 }
  0xb0   : > { %1178 = vmatpush.msra.mxu0 %v3017_v32  ;;  %1215 = vmatpush.msra.mxu1 %v2421_v12  ;;  %v3019_v12 = vand.u32 4294901760, %v2519_v55  ;;  %v1364_v58 = vand.u32 4294901760, %v1363_v35  ;;  %v3022_v55 = vld [vmem:[#allocation2_spill] sm:$0xff] }
  0xb1   : > { %1256 = vmatpush.msra.mxu2 %v2691_v50  ;;  %1347 = vmatpush.msra.mxu3 %v1346_v43 }
  0xb2   : > { %1182 = vmatpush.msra.mxu0 %v3018_v19  ;;  %1217 = vmatpush.msra.mxu1 %v2436_v57  ;;  %v3020_v57 = vand.u32 4294901760, %v2511_v27 }
  0xb3   : > { %1258 = vmatpush.msra.mxu2 %v2710_v3  ;;  %1353 = vmatpush.msra.mxu3 %v1352_v13 }
  0xb4   : > { %1080 = vmatmul.f32.vlgmr.msrb.gmra.mxu2 %v2145_v10  ;;  %1186 = vmatpush.msra.mxu0 %v3019_v12 }
  0xb5   : > { %1219 = vmatpush.msra.mxu1 %v2448_v44  ;;  %1260 = vmatpush.msra.mxu2 %v2731_v14  ;;  %v3023_v44 = vand.u32 4294901760, %v3022_v55 }
  0xb6   : > { %1359 = vmatpush.msra.mxu3 %v1358_v8  ;;  %925 = vmatmul.f32.vlgmr.msrb.gmra.mxu0 %v2193_v0 }
  0xb7   : > { %1119 = vmatmul.f32.vlgmr.msrb.gmra.mxu3 %v2166_v17  ;;  %1373 = vmatpush.msrb.mxu0 %v2511_v27  ;;  %v3025_v27 = vand.u32 4294901760, %v3024_v4 }
  0xb8   : > { %1467 = vmatpush.msrb.mxu2 %v3020_v57  ;;  %1221 = vmatpush.msra.mxu1 %v2471_v22  ;;  %v3026_v22 = vld [vmem:[#allocation4_spill] sm:$0xff] }
  0xb9   : > { %1365 = vmatpush.msra.mxu3 %v1364_v58  ;;  %1026 = vmatmul.f32.vlgmr.msrb.gmra.mxu1 %v3021_v56  ;;  %v3027_v42 = vand.u32 4294901760, %v3026_v22 }
  0xba   : > { %1376 = vmatpush.msrb.mxu0 %v3022_v55  ;;  %1471 = vmatpush.msrb.mxu2 %v3023_v44 }
  0xbb   : > { %1534 = vmatpush.msrb.mxu3 %v2481_v26  ;;  %1223 = vmatpush.msra.mxu1 %v2488_v61  ;;  %v3028_v61 = vld [vmem:[#allocation5_spill] sm:$0xff] }
  0xbc   : > { %1379 = vmatpush.msrb.mxu0 %v3024_v4  ;;  %1475 = vmatpush.msrb.mxu2 %v3025_v27 }
  0xbd   : > { %1426 = vmatpush.msrb.mxu1 %v2481_v26  ;;  %1536 = vmatpush.msrb.mxu3 %v2503_v7  ;;  %v3029_v26 = vand.u32 4294901760, %v3028_v61 }
  0xbe   : > { %1382 = vmatpush.msrb.mxu0 %v3026_v22  ;;  %1479 = vmatpush.msrb.mxu2 %v3027_v42 }
  0xbf   : > { %1428 = vmatpush.msrb.mxu1 %v2503_v7  ;;  %1538 = vmatpush.msrb.mxu3 %v2521_v11  ;;  %v3030_v7 = vand.u32 4294901760, %v2589_v52 }
  0xc0   : > { %1188 = vmatmul.f32.vlgmr.msra.gmra.mxu0 %v3021_v56  ;;  %1483 = vmatpush.msrb.mxu2 %v3029_v26 }
  0xc1   : > { %1430 = vmatpush.msrb.mxu1 %v2521_v11  ;;  %1385 = vmatpush.msrb.mxu0 %v3028_v61  ;;  %v3031_v11 = vand.u32 4294901760, %v2613_v16 }
  0xc2   : > { %1540 = vmatpush.msrb.mxu3 %v2536_v29  ;;  %1225 = vmatmul.f32.vlgmr.msra.gmra.mxu1 %v3021_v56 }
  0xc3   : > { %1388 = vmatpush.msrb.mxu0 %v2589_v52  ;;  %1432 = vmatpush.msrb.mxu1 %v2536_v29  ;;  %v3032_v29 = vand.u32 4294901760, %v2629_v20 }
  0xc4   : > { %1487 = vmatpush.msrb.mxu2 %v3030_v7  ;;  %1542 = vmatpush.msrb.mxu3 %v2546_v47 }
  0xc5   : > { %1391 = vmatpush.msrb.mxu0 %v2613_v16  ;;  %1434 = vmatpush.msrb.mxu1 %v2546_v47 }
  0xc6   : > { %1491 = vmatpush.msrb.mxu2 %v3031_v11  ;;  %1544 = vmatpush.msrb.mxu3 %v2555_v1 }
  0xc7   : > { %1394 = vmatpush.msrb.mxu0 %v2629_v20  ;;  %1436 = vmatpush.msrb.mxu1 %v2555_v1 }
  0xc8   : > { %1495 = vmatpush.msrb.mxu2 %v3032_v29  ;;  %1546 = vmatpush.msrb.mxu3 %v2585_v59 }
  0xc9   : > { %1397 = vmatpush.msrb.mxu0 %v2644_v36  ;;  %1438 = vmatpush.msrb.mxu1 %v2585_v59 }
  0xca   : > { %1499 = vmatpush.msrb.mxu2 %v1320_v62  ;;  %1548 = vmatpush.msrb.mxu3 %v2600_v34 }
  0xcb   : > { %1400 = vmatpush.msrb.mxu0 %v2660_v60  ;;  %1440 = vmatpush.msrb.mxu1 %v2600_v34  ;;  %v244_v20 = vpop.f32.mrf.mxu0 }
  0xcc   : > { %1503 = vmatpush.msrb.mxu2 %v1326_v2  ;;  %1550 = vmatpush.msrb.mxu3 %v2615_v21 }
  0xcd   : > { %1403 = vmatpush.msrb.mxu0 %v2676_v49  ;;  %1442 = vmatpush.msrb.mxu1 %v2615_v21 }
  0xce   : > { %1507 = vmatpush.msrb.mxu2 %v1332_v31  ;;  %1552 = vmatpush.msrb.mxu3 %v2631_v23 }
  0xcf   : > { %1406 = vmatpush.msrb.mxu0 %v2689_v48  ;;  %1444 = vmatpush.msrb.mxu1 %v2631_v23 }
  0xd0   : > { %1511 = vmatpush.msrb.mxu2 %v1338_v30  ;;  %1554 = vmatpush.msrb.mxu3 %v2646_v63 }
  0xd1   : > { %v345_v34 = vpop.f32.mrf.mxu1  ;;  %1266 = vmatmul.f32.vlgmr.msra.gmra.mxu2 %v2193_v0  ;;  %1367 = vmatmul.f32.vlgmr.msra.gmra.mxu3 %v3021_v56  ;;  %v399_v47 = vpop.f32.mrf.mxu2 }
  0xd2   : > { %v346_v36 = vadd.f32 %v345_v34, %v244_v20  ;;  %1409 = vmatpush.msrb.mxu0 %v2705_v53  ;;  %1446 = vmatpush.msrb.mxu1 %v2646_v63 }
  0xd3   : > { %1515 = vmatpush.msrb.mxu2 %v1344_v38  ;;  %1556 = vmatpush.msrb.mxu3 %v2662_v40  ;;  %v438_v0 = vpop.f32.mrf.mxu3 }
  0xd4   : > { %v400_v16 = vadd.f32 %v399_v47, %v346_v36  ;;  %1412 = vmatpush.msrb.mxu0 %v2721_v28  ;;  %1448 = vmatpush.msrb.mxu1 %v2662_v40 }
  0xd5   : > { %1519 = vmatpush.msrb.mxu2 %v1350_v5  ;;  %1558 = vmatpush.msrb.mxu3 %v2678_v6 }
  0xd6   : > { %v439_v1 = vadd.f32 %v438_v0, %v400_v16  ;;  %1415 = vmatpush.msrb.mxu0 %v2737_v25  ;;  %1450 = vmatpush.msrb.mxu1 %v2678_v6 }
  0xd7   : > { %1523 = vmatpush.msrb.mxu2 %v1356_v41  ;;  %1560 = vmatpush.msrb.mxu3 %v2691_v50  ;;  %v507_v59 = vpop.f32.mrf.mxu0 }
  0xd8   : > { %1418 = vmatpush.msrb.mxu0 %v2752_v9  ;;  %1452 = vmatpush.msrb.mxu1 %v2691_v50  ;;  %v508_v52 = vadd.f32 %v507_v59, %v439_v1 }
  0xd9   : > { %1527 = vmatpush.msrb.mxu2 %v1362_v24  ;;  %1562 = vmatpush.msrb.mxu3 %v2710_v3  ;;  %v544_v21 = vpop.f32.mrf.mxu1 }
  0xda   : > { %1421 = vmatmul.f32.vlgmr.msrb.gmra.mxu0 %v2145_v10  ;;  %1529 = vmatmul.f32.vlgmr.msrb.gmra.mxu2 %v3021_v56  ;;  %v545_v23 = vadd.f32 %v544_v21, %v508_v52 }
  0xdb   : > { %1454 = vmatpush.msrb.mxu1 %v2710_v3  ;;  %1564 = vmatpush.msrb.mxu3 %v2731_v14 }
  0xdc   : > { %1566 = vmatmul.f32.vlgmr.msrb.gmra.mxu3 %v3021_v56  ;;  %1570 = vst [vmem:[%s2880_s10] sm:$0xff] %v545_v23 }
  0xdd   : > { %1456 = vmatpush.msrb.mxu1 %v2731_v14 }
  0xde   : > { %1460 = vmatmul.f32.vlgmr.msrb.gmra.mxu1 %v2166_v17 }
  0xf4   : > { %v585_v50 = vpop.f32.mrf.mxu2 }
  0xf7   : > { %v686_v63 = vpop.f32.mrf.mxu3 }
  0xf8   : > { %v687_v60 = vadd.f32 %v686_v63, %v585_v50 }
  0xf9   : > { %v740_v40 = vpop.f32.mrf.mxu0 }
  0xfa   : > { %v741_v10 = vadd.f32 %v740_v40, %v687_v60 }
  0xfc   : > { %v779_v62 = vpop.f32.mrf.mxu1 }
  0xfd   : > { %v780_v49 = vadd.f32 %v779_v62, %v741_v10  ;;  %v848_v6 = vpop.f32.mrf.mxu2 }
  0xff   : > { %v849_v2 = vadd.f32 %v848_v6, %v780_v49 }
 0x100   : > { %v885_v48 = vpop.f32.mrf.mxu3 }
 0x101   : > { %v886_v31 = vadd.f32 %v885_v48, %v849_v2 }
 0x103   : > { %1571 = vst [vmem:[%s2880_s10 + $0x8] sm:$0xff] %v886_v31 }
 0x133   : > { %v926_v53 = vpop.f32.mrf.mxu0 }
 0x136   : > { %v1027_v3 = vpop.f32.mrf.mxu1 }
 0x137   : > { %v1028_v30 = vadd.f32 %v1027_v3, %v926_v53  ;;  %v1081_v28 = vpop.f32.mrf.mxu2 }
 0x139   : > { %v1082_v38 = vadd.f32 %v1081_v28, %v1028_v30 }
 0x13a   : > { %v1120_v14 = vpop.f32.mrf.mxu3 }
 0x13b   : > { %v1121_v17 = vadd.f32 %v1120_v14, %v1082_v38 }
 0x13d   : > { %v1189_v25 = vpop.f32.mrf.mxu0 }
 0x13e   : > { %v1190_v5 = vadd.f32 %v1189_v25, %v1121_v17 }
 0x13f   : > { %v1226_v18 = vpop.f32.mrf.mxu1 }
 0x140   : > { %v1227_v39 = vadd.f32 %v1226_v18, %v1190_v5 }
 0x142   : > { %1572 = vst [vmem:[%s2880_s10 + $0x10] sm:$0xff] %v1227_v39 }
 0x154   : > { %v1267_v46 = vpop.f32.mrf.mxu2  ;;  %v1368_v9 = vpop.f32.mrf.mxu3 }
 0x155   : > { %v1369_v37 = vadd.f32 %v1368_v9, %v1267_v46 }
 0x157   : > { %v1422_v41 = vpop.f32.mrf.mxu0 }
 0x158   : > { %v1423_v54 = vadd.f32 %v1422_v41, %v1369_v37 }
 0x15b   : > { %v1461_v15 = vpop.f32.mrf.mxu1 }
 0x15c   : > { %v1462_v45 = vadd.f32 %v1461_v15, %v1423_v54 }
 0x15d   : > { %v1530_v43 = vpop.f32.mrf.mxu2 }
 0x15e   : > { %v1531_v24 = vadd.f32 %v1530_v43, %v1462_v45 }
 0x15f   : > { %v1567_v33 = vpop.f32.mrf.mxu3 }
 0x160   : > { %v1568_v51 = vadd.f32 %v1567_v33, %v1531_v24 }
 0x162   : > { %1573 = vst [vmem:[%s2880_s10 + $0x18] sm:$0xff] %v1568_v51 }
 0x163 PF: > { %s12_s9 = sadd.s32 1, %s1654_s9  }
 0x164   : > { %p9_p4 = scmp.ge.s32.totalorder %s12_s9, 4  }
 0x166   :  { %11 = sbr.rel (!%p9_p4) target bundleno = 1 (0x1), region = 58 }

</bundles_post_ra>
